<compile_context>
chip_gen: v7x
topology: tpu7x:2x2x1
jax: 0.10.0
libtpu: 0.0.40
codegen_flags: <defaults>
</compile_context>

<pallas_src>
import functools

import jax
import jax.numpy as jnp
from jax import lax
from jax.experimental import pallas as pl
from jax.experimental.pallas import tpu as pltpu


def _round_up(n, m):
    return -(-n // m) * m


def fixed_hidden_mlp_kernel(x_ref, p_ref, out_ref, acc_ref, *, d, rw_off, b_off,
                            batch, tile):
    # x_ref  : (tile, d)       one tile of input rows            (VMEM)
    # p_ref  : (2*off + 8, d)  packed params                     (VMEM, resident)
    #            rows [0, d)             -> linear.weight^T  (y = x @ W^T + b)
    #            rows [rw_off, rw_off+d) -> rand_weight
    #            row  b_off              -> linear.bias
    # out_ref: (1, 1)          scalar result                     (VMEM, resident)
    # acc_ref: (1, 2)          running [sum(h), sum(|h|)]        (VMEM scratch)
    step = pl.program_id(0)

    @pl.when(step == 0)
    def _init():
        acc_ref[...] = jnp.zeros_like(acc_ref)

    x = x_ref[...]                              # (tile, d) f32
    wt = p_ref[0:d, :]                          # W^T         (d, d)
    rw = p_ref[rw_off:rw_off + d, :]            # rand_weight (d, d)
    b = p_ref[b_off:b_off + 1, :]               # bias        (1, d)

    hp = lax.Precision.HIGHEST                  # keep f32 numerics exact
    # x = self.linear(x)
    h = jnp.dot(x, wt, preferred_element_type=jnp.float32, precision=hp) + b
    # x = relu(x @ rand_weight + 1)
    h = jnp.maximum(
        jnp.dot(h, rw, preferred_element_type=jnp.float32, precision=hp) + 1.0,
        0.0)
    # x = self.linear(x)   (same shared Linear)
    h = jnp.dot(h, wt, preferred_element_type=jnp.float32, precision=hp) + b

    # Mask rows past the true batch (zero-padded rows would otherwise contribute
    # bias / relu(+1) terms), then fold this tile into the running
    # [sum(h), sum(|h|)] accumulator: one lane-reduce per quantity, one shared
    # cross-sublane reduce.
    row = lax.broadcasted_iota(jnp.int32, (tile, 1), 0) + step * tile
    valid = row < batch
    h_rows = jnp.where(valid, jnp.sum(h, axis=1, keepdims=True), 0.0)
    a_rows = jnp.where(valid, jnp.sum(jnp.abs(h), axis=1, keepdims=True), 0.0)
    acc_ref[...] += jnp.sum(jnp.concatenate([h_rows, a_rows], axis=1),
                            axis=0, keepdims=True)                     # (1, 2)

    @pl.when(step == pl.num_programs(0) - 1)
    def _finalize():
        acc = acc_ref[...]                       # (1, 2)
        total = acc[:, 0:1]                      # sum(h)    (1, 1)
        s = acc[:, 1:2]                          # sum(|h|)  (1, 1)
        # while x.abs().sum() > 1: x /= 2   -- closed form on s:
        #   s <= 1            -> k = 0
        #   s == 2^e exactly  -> k = e
        #   otherwise         -> k = e + 1    (e = unbiased exponent of s)
        # Each /2 only decrements exponents, and scaling by 2^-k commutes with
        # the summation, so the answer is sum(h) * 2^-k.
        bits = pltpu.bitcast(s, jnp.int32)
        exp_u = ((bits >> 23) & 0xFF) - 127
        mant_nz = (bits & 0x7FFFFF) != 0
        k = jnp.where(s > 1.0, exp_u + mant_nz.astype(jnp.int32), 0)
        k = jnp.clip(k, 0, 126)                  # keep 2^-k a valid normal float
        scale = pltpu.bitcast((127 - k) << 23, jnp.float32)   # exact 2^-k
        out_ref[...] = total * scale             # return x.sum()


def pack_params(linear_w, linear_b, rand_weight):
    """One-time setup: pack W^T, rand_weight, bias into one sublane-aligned buffer."""
    d = linear_w.shape[0]
    off = _round_up(d, 8)                        # sublane-aligned section offsets
    rows = 2 * off + 8
    p = jnp.zeros((rows, d), jnp.float32)
    p = p.at[0:d, :].set(jnp.asarray(linear_w, jnp.float32).T)         # W^T
    p = p.at[off:off + d, :].set(jnp.asarray(rand_weight, jnp.float32))
    p = p.at[2 * off, :].set(jnp.asarray(linear_b, jnp.float32))
    return p


@jax.jit
def fixed_hidden_mlp(x, packed_params):
    """x: (B, d) float; packed_params: output of pack_params(). Returns scalar."""
    x = x.astype(jnp.float32)
    batch, d = x.shape
    off = (packed_params.shape[0] - 8) // 2

    # Row tile: sublane multiple; caps at 512 rows (HBM-roofline sweet spot) for
    # large B, single tile for small B.  Grid iterates tiles sequentially and
    # accumulates partial sums (reduction axis -> "arbitrary").
    tile = min(512, _round_up(batch, 8))
    padded = _round_up(batch, tile)
    if padded != batch:
        x = jnp.pad(x, ((0, padded - batch), (0, 0)))
    num_tiles = padded // tile

    kernel = functools.partial(
        fixed_hidden_mlp_kernel, d=d, rw_off=off, b_off=2 * off,
        batch=batch, tile=tile)

    cost = pl.CostEstimate(
        flops=3 * 2 * batch * d * d + 6 * batch * d,
        transcendentals=0,
        bytes_accessed=(padded * d + packed_params.size + 1) * 4)

    out = pl.pallas_call(
        kernel,
        out_shape=jax.ShapeDtypeStruct((1, 1), jnp.float32),
        grid_spec=pltpu.PrefetchScalarGridSpec(
            num_scalar_prefetch=0,
            grid=(num_tiles,),
            in_specs=[
                pl.BlockSpec((tile, d), lambda i: (i, 0)),             # x tile
                pl.BlockSpec(packed_params.shape, lambda i: (0, 0)),   # params (resident)
            ],
            out_specs=pl.BlockSpec((1, 1), lambda i: (0, 0)),          # scalar (resident)
            scratch_shapes=[pltpu.VMEM((1, 2), jnp.float32)],          # [sum, abs-sum]
        ),
        compiler_params=pltpu.CompilerParams(
            dimension_semantics=("arbitrary",)),    # reduction over row tiles
        cost_estimate=cost,
    )(x, packed_params)
    return out[0, 0]


if __name__ == "__main__":
    key = jax.random.PRNGKey(0)
    k_x, k_rw, k_w, k_b = jax.random.split(key, 4)

    B, D = 2, 20                                 # torch.rand(2, 20) in the d2l example
    x = jax.random.uniform(k_x, (B, D), dtype=jnp.float32)
    # self.rand_weight = torch.rand((20, 20))  -> uniform [0, 1)
    rand_weight = jax.random.uniform(k_rw, (D, D), dtype=jnp.float32)
    # nn.Linear(20, 20) default init: uniform(-1/sqrt(in), 1/sqrt(in))
    bound = 1.0 / (D ** 0.5)
    linear_w = jax.random.uniform(k_w, (D, D), minval=-bound, maxval=bound,
                                  dtype=jnp.float32)
    linear_b = jax.random.uniform(k_b, (D,), minval=-bound, maxval=bound,
                                  dtype=jnp.float32)

    params = pack_params(linear_w, linear_b, rand_weight)   # one-time setup cost
    out = jax.block_until_ready(fixed_hidden_mlp(x, params))

    # pure-JAX reference with the original data-dependent while loop
    def ref(xv):
        hp = lax.Precision.HIGHEST
        h = jnp.dot(xv, linear_w.T, precision=hp) + linear_b
        h = jnp.maximum(jnp.dot(h, rand_weight, precision=hp) + 1.0, 0.0)
        h = jnp.dot(h, linear_w.T, precision=hp) + linear_b
        h = lax.while_loop(lambda v: jnp.sum(jnp.abs(v)) > 1.0,
                           lambda v: v / 2.0, h)
        return jnp.sum(h)

    expected = jax.block_until_ready(ref(x))
    assert jnp.allclose(out, expected, rtol=1e-5, atol=1e-5), (out, expected)
    print("KERNEL_OK")
</pallas_src>

<mosaic_0001>
module attributes {stable_mosaic.version = 11 : i64} {
  func.func @fixed_hidden_mlp_kernel(%arg0: i32, %arg1: memref<8x20xf32, #tpu.memory_space<vmem>>, %arg2: memref<56x20xf32, #tpu.memory_space<vmem>>, %arg3: memref<1x1xf32, #tpu.memory_space<vmem>>, %arg4: memref<1x2xf32, #tpu.memory_space<vmem>>) attributes {dimension_semantics = [#tpu.dimension_semantics<arbitrary>], iteration_bounds = array<i64: 1>, scalar_prefetch = 0 : i64, scratch_operands = 1 : i64, tpu.core_type = #tpu.core_type<tc>, window_params = [{transform_indices = @transform_0, window_bounds = array<i64: 8, 20>}, {pipeline_mode = #tpu.pipeline_mode<synchronous>, transform_indices = @transform_1, window_bounds = array<i64: 56, 20>}, {pipeline_mode = #tpu.pipeline_mode<synchronous>, transform_indices = @transform_2, window_bounds = array<i64: 1, 1>}]} {
    %c0_i32 = arith.constant 0 : i32
    %0 = arith.cmpi eq, %arg0, %c0_i32 : i32
    %1 = arith.extui %0 : i1 to i32
    %c0_i32_0 = arith.constant 0 : i32
    %2 = arith.cmpi ne, %1, %c0_i32_0 : i32
    scf.if %2 {
      %cst_21 = arith.constant 0.000000e+00 : f32
      %42 = vector.broadcast %cst_21 : f32 to vector<1x2xf32>
      %c0_22 = arith.constant 0 : index
      %c0_23 = arith.constant 0 : index
      %43 = vector.load %arg4[%c0_22, %c0_23] : memref<1x2xf32, #tpu.memory_space<vmem>>, vector<1x2xf32>
      tpu.vector_store %arg4[%c0_22, %c0_23], %42 {strides = array<i32>} : memref<1x2xf32, #tpu.memory_space<vmem>>, vector<1x2xf32>,
    } else {
    }
    %c0 = arith.constant 0 : index
    %c0_1 = arith.constant 0 : index
    %3 = vector.load %arg1[%c0, %c0_1] : memref<8x20xf32, #tpu.memory_space<vmem>>, vector<8x20xf32>
    %c0_2 = arith.constant 0 : index
    %c0_3 = arith.constant 0 : index
    %4 = vector.load %arg2[%c0_2, %c0_3] : memref<56x20xf32, #tpu.memory_space<vmem>>, vector<20x20xf32>
    %c24 = arith.constant 24 : index
    %c0_4 = arith.constant 0 : index
    %5 = vector.load %arg2[%c24, %c0_4] : memref<56x20xf32, #tpu.memory_space<vmem>>, vector<20x20xf32>
    %c48 = arith.constant 48 : index
    %c0_5 = arith.constant 0 : index
    %6 = vector.load %arg2[%c48, %c0_5] : memref<56x20xf32, #tpu.memory_space<vmem>>, vector<1x20xf32>
    %cst = arith.constant dense<0.000000e+00> : vector<8x20xf32>
    %7 = tpu.matmul %3, %4, %cst {dimension_numbers = #tpu.dot_dimension_numbers<[1], [0], [0], [1], [0, 0, 1, 1], [], []>, precision = #tpu.contract_precision<fp32>} : vector<8x20xf32>, vector<20x20xf32>, vector<8x20xf32> -> vector<8x20xf32>
    %8 = vector.broadcast %6 : vector<1x20xf32> to vector<8x20xf32>
    %9 = arith.addf %7, %8 : vector<8x20xf32>
    %cst_6 = arith.constant dense<0.000000e+00> : vector<8x20xf32>
    %10 = tpu.matmul %9, %5, %cst_6 {dimension_numbers = #tpu.dot_dimension_numbers<[1], [0], [0], [1], [0, 0, 1, 1], [], []>, precision = #tpu.contract_precision<fp32>} : vector<8x20xf32>, vector<20x20xf32>, vector<8x20xf32> -> vector<8x20xf32>
    %cst_7 = arith.constant 1.000000e+00 : f32
    %11 = vector.broadcast %cst_7 : f32 to vector<8x20xf32>
    %12 = arith.addf %10, %11 : vector<8x20xf32>
    %cst_8 = arith.constant 0.000000e+00 : f32
    %13 = vector.broadcast %cst_8 : f32 to vector<8x20xf32>
    %14 = arith.maximumf %12, %13 : vector<8x20xf32>
    %cst_9 = arith.constant dense<0.000000e+00> : vector<8x20xf32>
    %15 = tpu.matmul %14, %4, %cst_9 {dimension_numbers = #tpu.dot_dimension_numbers<[1], [0], [0], [1], [0, 0, 1, 1], [], []>, precision = #tpu.contract_precision<fp32>} : vector<8x20xf32>, vector<20x20xf32>, vector<8x20xf32> -> vector<8x20xf32>
    %16 = vector.broadcast %6 : vector<1x20xf32> to vector<8x20xf32>
    %17 = arith.addf %15, %16 : vector<8x20xf32>
    %18 = tpu.iota {dimensions = array<i32: 0>} : vector<8x1xi32>
    %c8_i32 = arith.constant 8 : i32
    %19 = arith.muli %arg0, %c8_i32 : i32
    %20 = vector.broadcast %19 : i32 to vector<8x1xi32>
    %21 = arith.addi %18, %20 : vector<8x1xi32>
    %c2_i32 = arith.constant 2 : i32
    %22 = vector.broadcast %c2_i32 : i32 to vector<8x1xi32>
    %23 = arith.cmpi slt, %21, %22 : vector<8x1xi32>
    %cst_10 = arith.constant dense<0.000000e+00> : vector<8xf32>
    %24 = vector.multi_reduction <add>, %17, %cst_10 [1] : vector<8x20xf32> to vector<8xf32>
    %25 = vector.shape_cast %24 : vector<8xf32> to vector<8x1xf32>
    %cst_11 = arith.constant 0.000000e+00 : f32
    %26 = vector.broadcast %cst_11 : f32 to vector<8x1xf32>
    %27 = arith.select %23, %25, %26 : vector<8x1xi1>, vector<8x1xf32>
    %28 = math.absf %17 : vector<8x20xf32>
    %cst_12 = arith.constant dense<0.000000e+00> : vector<8xf32>
    %29 = vector.multi_reduction <add>, %28, %cst_12 [1] : vector<8x20xf32> to vector<8xf32>
    %30 = vector.shape_cast %29 : vector<8xf32> to vector<8x1xf32>
    %cst_13 = arith.constant 0.000000e+00 : f32
    %31 = vector.broadcast %cst_13 : f32 to vector<8x1xf32>
    %32 = arith.select %23, %30, %31 : vector<8x1xi1>, vector<8x1xf32>
    %c0_14 = arith.constant 0 : index
    %c0_15 = arith.constant 0 : index
    %33 = vector.load %arg4[%c0_14, %c0_15] : memref<1x2xf32, #tpu.memory_space<vmem>>, vector<1x2xf32>
    %34 = tpu.concatenate %27, %32 in 1 : vector<8x1xf32>, vector<8x1xf32> -> vector<8x2xf32>
    %cst_16 = arith.constant dense<0.000000e+00> : vector<2xf32>
    %35 = vector.multi_reduction <add>, %34, %cst_16 [0] : vector<8x2xf32> to vector<2xf32>
    %36 = vector.shape_cast %35 : vector<2xf32> to vector<1x2xf32>
    %37 = arith.addf %33, %36 : vector<1x2xf32>
    %c0_17 = arith.constant 0 : index
    %c0_18 = arith.constant 0 : index
    %38 = vector.load %arg4[%c0_17, %c0_18] : memref<1x2xf32, #tpu.memory_space<vmem>>, vector<1x2xf32>
    tpu.vector_store %arg4[%c0_17, %c0_18], %37 {strides = array<i32>} : memref<1x2xf32, #tpu.memory_space<vmem>>, vector<1x2xf32>,
    %c0_i32_19 = arith.constant 0 : i32
    %39 = arith.cmpi eq, %arg0, %c0_i32_19 : i32
    %40 = arith.extui %39 : i1 to i32
    %c0_i32_20 = arith.constant 0 : i32
    %41 = arith.cmpi ne, %40, %c0_i32_20 : i32
    scf.if %41 {
      %c0_21 = arith.constant 0 : index
      %c0_22 = arith.constant 0 : index
      %42 = vector.load %arg4[%c0_21, %c0_22] : memref<1x2xf32, #tpu.memory_space<vmem>>, vector<1x2xf32>
      %43 = vector.extract_strided_slice %42 {offsets = [0, 0], sizes = [1, 1], strides = [1, 1]} : vector<1x2xf32> to vector<1x1xf32>
      %44 = vector.extract_strided_slice %42 {offsets = [0, 1], sizes = [1, 1], strides = [1, 1]} : vector<1x2xf32> to vector<1x1xf32>
      %45 = tpu.bitcast %44 : vector<1x1xf32> -> vector<1x1xi32>
      %c23_i32 = arith.constant 23 : i32
      %46 = vector.broadcast %c23_i32 : i32 to vector<1x1xi32>
      %47 = arith.shrsi %45, %46 : vector<1x1xi32>
      %c255_i32 = arith.constant 255 : i32
      %48 = vector.broadcast %c255_i32 : i32 to vector<1x1xi32>
      %49 = arith.andi %47, %48 : vector<1x1xi32>
      %c127_i32 = arith.constant 127 : i32
      %50 = vector.broadcast %c127_i32 : i32 to vector<1x1xi32>
      %51 = arith.subi %49, %50 : vector<1x1xi32>
      %c8388607_i32 = arith.constant 8388607 : i32
      %52 = vector.broadcast %c8388607_i32 : i32 to vector<1x1xi32>
      %53 = arith.andi %45, %52 : vector<1x1xi32>
      %c0_i32_23 = arith.constant 0 : i32
      %54 = vector.broadcast %c0_i32_23 : i32 to vector<1x1xi32>
      %55 = arith.cmpi ne, %53, %54 : vector<1x1xi32>
      %cst_24 = arith.constant 1.000000e+00 : f32
      %56 = vector.broadcast %cst_24 : f32 to vector<1x1xf32>
      %57 = arith.cmpf ogt, %44, %56 : vector<1x1xf32>
      %58 = arith.extui %55 : vector<1x1xi1> to vector<1x1xi32>
      %59 = arith.addi %51, %58 : vector<1x1xi32>
      %c0_i32_25 = arith.constant 0 : i32
      %60 = vector.broadcast %c0_i32_25 : i32 to vector<1x1xi32>
      %61 = arith.select %57, %59, %60 : vector<1x1xi1>, vector<1x1xi32>
      %c0_i32_26 = arith.constant 0 : i32
      %c126_i32 = arith.constant 126 : i32
      %62 = vector.broadcast %c0_i32_26 : i32 to vector<1x1xi32>
      %63 = arith.maxsi %62, %61 : vector<1x1xi32>
      %64 = vector.broadcast %c126_i32 : i32 to vector<1x1xi32>
      %65 = arith.minsi %64, %63 : vector<1x1xi32>
      %c127_i32_27 = arith.constant 127 : i32
      %66 = vector.broadcast %c127_i32_27 : i32 to vector<1x1xi32>
      %67 = arith.subi %66, %65 : vector<1x1xi32>
      %c23_i32_28 = arith.constant 23 : i32
      %68 = vector.broadcast %c23_i32_28 : i32 to vector<1x1xi32>
      %69 = arith.shli %67, %68 : vector<1x1xi32>
      %70 = tpu.bitcast %69 : vector<1x1xi32> -> vector<1x1xf32>
      %71 = arith.mulf %43, %70 : vector<1x1xf32>
      %c0_29 = arith.constant 0 : index
      %c0_30 = arith.constant 0 : index
      %72 = vector.load %arg3[%c0_29, %c0_30] : memref<1x1xf32, #tpu.memory_space<vmem>>, vector<1x1xf32>
      tpu.vector_store %arg3[%c0_29, %c0_30], %71 {strides = array<i32>} : memref<1x1xf32, #tpu.memory_space<vmem>>, vector<1x1xf32>,
    } else {
    }
    return
  }
  func.func @transform_0(%arg0: i32) -> (i32, i32) {
    %c0_i32 = arith.constant 0 : i32
    %c0_i32_0 = arith.constant 0 : i32
    return %arg0, %c0_i32 : i32, i32
  }
  func.func @transform_1(%arg0: i32) -> (i32, i32) {
    %c0_i32 = arith.constant 0 : i32
    %c0_i32_0 = arith.constant 0 : i32
    %c0_i32_1 = arith.constant 0 : i32
    return %c0_i32, %c0_i32_0 : i32, i32
  }
  func.func @transform_2(%arg0: i32) -> (i32, i32) {
    %c0_i32 = arith.constant 0 : i32
    %c0_i32_0 = arith.constant 0 : i32
    %c0_i32_1 = arith.constant 0 : i32
    return %c0_i32, %c0_i32_0 : i32, i32
  }
}

</mosaic_0001>

<bundles_post_ra>
// kernel: fixed_hidden_mlp.1
= control target key start
LH: loop header
LB: loop body
LE: loop exit
PB: predicated region body
PF: predicated region fallthrough
CT: control target
= control target key end

     0   :  { %v1900_v3 = vmov 0.0|0.0   ;;  %vm34_vm0 = vcmask 1043456   ;;  %vm1901_vm1 = vmmov 0   ;;  %v1902_v8 = vmov 0.0   ;;  %s2088_s0 = inlined_call_operand.vmem [shape: f32[8,20], index: 0, kind: input, shape index: {}]   ;;  %s2089_s1 = inlined_call_operand.vmem [shape: f32[56,20], index: 1, kind: input, shape index: {}]   ;;  %s2090_s2 = inlined_call_operand.hbm [shape: f32[1,1], index: 2, kind: output, shape index: {}]  }
   0x1   :  { %v19_v0 = vld [vmem:[%s2089_s1] sm:$0xff]  ;;  %v20_v1 = vld [vmem:[%s2089_s1 + $0x8] sm:$0xff]  ;;  %v21_v2 = vld [vmem:[%s2089_s1 + $0x10] sm:$0xf]  ;;  %1792 = vmatprep.subr.bf16.mxu0 %v1900_v3  ;;  %1783 = vmatprep.subr.bf16.mxu1 %v1900_v3  ;;  %vm30_vm2 = vcmask 162816  }
   0x2   :  { %v39_v4 = vand.u32 4294901760, %v19_v0  ;;  %v42_v5 = vand.u32 4294901760, %v20_v1  ;;  %v18_v6 = vld [vmem:[%s2088_s0] sm:$0xff]  ;;  %v36_v7 = vsel %vm34_vm0, %v21_v2, 0  ;;  %1654 = vmatprep.mubr.msk.f32.mxu0 %vm1901_vm1, %v1902_v8  ;;  %1627 = vmatprep.mubr.msk.f32.mxu1 %vm1901_vm1, %v1902_v8 }
   0x3   :  { %7 = vsyncpa [#allocation4], 0  ;;  %v1943_v10 = vand.u32 4294901760, %v36_v7  ;;  %v32_v11 = vsel %vm30_vm2, %v18_v6, 0  ;;  %v22_v32 = vld [vmem:[%s2089_s1 + $0x18] sm:$0xff]  ;;  %v23_v33 = vld [vmem:[%s2089_s1 + $0x20] sm:$0xff] }
   0x4   :  { %v1941_v9 = vpack.c.bf16 %v42_v5, %v39_v4  ;;  %v118_v12 = vsub.f32 %v19_v0, %v39_v4  ;;  %v106_v13 = vand.u32 4294901760, %v32_v11  ;;  %v125_v14 = vsub.f32 %v20_v1, %v42_v5  ;;  %v24_v36 = vld [vmem:[%s2089_s1 + $0x28] sm:$0xf]  ;;  %v2017_v53 = vld [vmem:[%s2089_s1 + $0x30] ss:$0 sm:$0xff]  ;;  %s1905_s1 = smov 127  }
   0x5   :  { %v1949_v16 = vsub.f32 %v36_v7, %v1943_v10  ;;  %v517_v34 = vand.u32 4294901760, %v22_v32  ;;  %v520_v35 = vand.u32 4294901760, %v23_v33  ;;  %v514_v40 = vsel %vm34_vm0, %v24_v36, 0  ;;  %s1906_s24 = smov [#allocation3]  }
   0x6   :  { %1794 = vmatpush3.bf16.msra.mxu0 %v1941_v9  ;;  %1785 = vmatpush3.bf16.msra.mxu1 %v1941_v9  ;;  %v119_v15 = vand.u32 4294901760, %v118_v12  ;;  %v107_v17 = vsub.f32 %v32_v11, %v106_v13  ;;  %v126_v18 = vand.u32 4294901760, %v125_v14  ;;  %v1979_v31 = vpack.c.bf16 %v125_v14, %v118_v12  ;;  %s1539_s25 = sshll.u32 %s1906_s24, 4  ;;  %s1540_s25 = int_to_ptr.vmem [resolvable:$true] %s1539_s25 }
   0x7   :  { %1652 = vmatprep.subr.mxu0 %v1902_v8  ;;  %1625 = vmatprep.subr.mxu1 %v1902_v8  ;;  %v1954_v20 = vand.u32 4294901760, %v1949_v16  ;;  %v1802_v37 = vpack.c.bf16 %v520_v35, %v517_v34  ;;  %v596_v38 = vsub.f32 %v22_v32, %v517_v34  ;;  %v603_v39 = vsub.f32 %v23_v33, %v520_v35  ;;  %s1876_s26 = scalar_lea.vmem %s1540_s25, 16  ;;  %s1880_s27 = scalar_lea.vmem %s1540_s25, 32 }
   0x8   :  { %v120_v19 = vsub.f32 %v118_v12, %v119_v15  ;;  %v108_v21 = vand.u32 4294901760, %v107_v17  ;;  %v127_v22 = vsub.f32 %v125_v14, %v126_v18  ;;  %v1956_v23 = vpack.c.bf16 %v126_v18, %v119_v15  ;;  %p1877_p0 = scmp.ne.s32.totalorder %s1540_s25, %s1876_s26  ;;  %p1881_p1 = scmp.lt.s32.totalorder %s1540_s25, %s1540_s25 }
   0x9   :  { %v134_v27 = vsub.f32 %v1949_v16, %v1954_v20  ;;  %v523_v41 = vand.u32 4294901760, %v514_v40  ;;  %v597_v42 = vand.u32 4294901760, %v596_v38  ;;  %v604_v43 = vand.u32 4294901760, %v603_v39  ;;  %p1882_p2 = scmp.lt.s32.totalorder %s1880_s27, %s1876_s26 }
   0xa   :  { %1653 = vmatpush3.msra.mxu0 %v1943_v10  ;;  %1626 = vmatpush3.msra.mxu1 %v1943_v10  ;;  %v121_v24 = vand.u32 4294901760, %v120_v19  ;;  %v109_v25 = vsub.f32 %v107_v17, %v108_v21  ;;  %v128_v26 = vand.u32 4294901760, %v127_v22  ;;  %v1808_v49 = vpack.c.bf16 %v603_v39, %v596_v38 }
   0xb   :  { %1655 = vmatmul.mubr.f32.vlgmr.msra.gmra.mrb[0].mxu0 %v108_v21  ;;  %1786 = vmatprep.subr.bf16.mxu1 %v1900_v3  ;;  %v1971_v30 = vand.u32 4294901760, %v134_v27  ;;  %v598_v44 = vsub.f32 %v596_v38, %v597_v42  ;;  %v605_v45 = vsub.f32 %v603_v39, %v604_v43  ;;  %v1814_v50 = vpack.c.bf16 %v604_v43, %v597_v42  ;;  %p1883_p3 = por %p1882_p2, %p1881_p1 }
   0xc   :  { %1795 = vmatprep.subr.bf16.mxu0 %v1900_v3  ;;  %1663 = vmatprep.mubr.msk.f32.mxu0 %vm1901_vm1, %v1902_v8  ;;  %v110_v28 = vand.u32 4294901760, %v109_v25  ;;  %v1966_v29 = vpack.c.bf16 %v128_v26, %v121_v24  ;;  %v610_v59 = vsub.f32 %v514_v40, %v523_v41  ;;  %vm16_vm3 = vcmask 8192  }
   0xd   :  { %1797 = vmatpush3.bf16.msra.mxu0 %v1956_v23  ;;  %v599_v46 = vand.u32 4294901760, %v598_v44  ;;  %v606_v47 = vand.u32 4294901760, %v605_v45  ;;  %17 = vst.msk [vmem:[#allocation2] sm:$0x1] %vm16_vm3, %v1902_v8  ;;  %vm1480_vm5 = vcmask 7168   ;;  %vm1482_vm6 = vcmask 15360   ;;  %p1884_p4 = pnand %p1883_p3, %p1877_p0 }
   0xe   :  { %1661 = vmatprep.subr.mxu0 %v1902_v8  ;;  %1628 = vmatmul.mubr.f32.vlgmr.msra.gmra.mrb[0].mxu1 %v110_v28  ;;  %v611_v62 = vand.u32 4294901760, %v610_v59  ;;  %v1904_v43 = vmov 1966171168   ;;  %vm1531_vm11 = vcmask 0  }
   0xf   :  { %1788 = vmatpush3.bf16.msra.mxu1 %v1966_v29  ;;  %1636 = vmatprep.mubr.msk.f32.mxu1 %vm1901_vm1, %v1902_v8  ;;  %v1805_v48 = vpack.c.bf16 %v606_v47, %v599_v46  ;;  %v1514_v44 = vunpack.c.l.s4 %v1904_v43 }
  0x10   :  { %1634 = vmatprep.subr.mxu1 %v1902_v8  ;;  %v612_v1 = vsub.f32 %v610_v59, %v611_v62 }
  0x11   :  { %1662 = vmatpush3.msra.mxu0 %v1954_v20  ;;  %v1515_v47 = vunpack.c.0.s8 %v1514_v44 }
  0x12   :  { %1798 = vmatprep.subr.bf16.mxu0 %v1900_v3  ;;  %v613_v4 = vand.u32 4294901760, %v612_v1 }
  0x13   :  { %1664 = vmatmul.mubr.f32.vlgmr.msra.gmra.mrb[0].mxu0 %v106_v13  ;;  %1635 = vmatpush3.msra.mxu1 %v1971_v30 }
  0x14   :  { %1800 = vmatpush3.bf16.msra.mxu0 %v1941_v9  ;;  %1789 = vmatprep.subr.bf16.mxu1 %v1900_v3  ;;  %v1479_v34 = vld [vmem:[#allocation2] sm:$0x1] }
  0x15   :  { %1670 = vmatprep.subr.mxu0 %v1902_v8  ;;  %1672 = vmatprep.mubr.msk.f32.mxu0 %vm1901_vm1, %v1902_v8 }
  0x16   :  { %1637 = vmatmul.mubr.f32.vlgmr.msra.gmra.mrb[0].mxu1 %v106_v13 }
  0x17   :  { %1791 = vmatpush3.bf16.msra.mxu1 %v1979_v31  ;;  %1645 = vmatprep.mubr.msk.f32.mxu1 %vm1901_vm1, %v1902_v8 }
  0x18   :  { %1671 = vmatpush3.msra.mxu0 %v1943_v10  ;;  %1643 = vmatprep.subr.mxu1 %v1902_v8 }
  0x19   :  { %1819 = vmatprep.subr.bf16.mxu0 %v1900_v3 }
  0x1b   :  { %1673 = vmatmul.mubr.f32.vlgmr.msra.gmra.mrb[0].mxu0 %v106_v13  ;;  %1644 = vmatpush3.msra.mxu1 %v1949_v16 }
  0x1c   :  { %1821 = vmatpush3.bf16.msra.mxu0 %v1941_v9  ;;  %1801 = vmatprep.subr.bf16.mxu1 %v1900_v3 }
  0x1d   :  { %1733 = vmatprep.subr.mxu0 %v1902_v8  ;;  %1735 = vmatprep.mubr.msk.f32.mxu0 %vm1901_vm1, %v1902_v8 }
  0x1e   :  { %1646 = vmatmul.mubr.f32.vlgmr.msra.gmra.mrb[0].mxu1 %v107_v17 }
  0x1f   :  { %1681 = vmatprep.mubr.msk.f32.mxu1 %vm1901_vm1, %v1902_v8  ;;  %1803 = vmatpush3.bf16.msra.mxu1 %v1802_v37 }
  0x20   :  { %1734 = vmatpush3.msra.mxu0 %v1943_v10  ;;  %1679 = vmatprep.subr.mxu1 %v1902_v8 }
  0x21   :  { %1822 = vmatprep.subr.bf16.mxu0 %v1900_v3 }
  0x23   :  { %1680 = vmatpush3.msra.mxu1 %v523_v41 }
  0x24   :  { %1804 = vmatprep.subr.bf16.mxu1 %v1900_v3 }
  0xee   :  { %v506_v51 = vpop.f32.mrb[0].mxu0 }
  0xef   :  { %v1674_v52 = vpop.f32.mrb[1].mxu0 }
  0xf1   :  { %v276_v54 = vpop.f32.mrb[0].mxu1 }
  0xf2   :  { %v1837_v55 = vadd.f32 %v2017_v53, %v276_v54  ;;  %v1647_v56 = vpop.f32.mrb[1].mxu1 }
  0xf4   :  { %v1838_v57 = vadd.f32 %v1837_v55, %v506_v51 }
  0xf6   :  { %v511_v58 = vsel %vm30_vm2, %v1838_v57, 0 }
  0xf7   :  { %v584_v60 = vand.u32 4294901760, %v511_v58 }
  0xf9   :  { %v585_v61 = vsub.f32 %v511_v58, %v584_v60 }
  0xfb   :  { %v586_v63 = vand.u32 4294901760, %v585_v61 }
  0xfd   :  { %v587_v0 = vsub.f32 %v585_v61, %v586_v63 }
  0xff   :  { %v588_v2 = vand.u32 4294901760, %v587_v0 }
 0x101   :  { %1682 = vmatmul.mubr.f32.vlgmr.msra.gmra.mrb[2].mxu1 %v588_v2 }
 0x102   :  { %1806 = vmatpush3.bf16.msra.mxu1 %v1805_v48  ;;  %1690 = vmatprep.mubr.msk.f32.mxu1 %vm1901_vm1, %v1902_v8 }
 0x103   :  { %1688 = vmatprep.subr.mxu1 %v1902_v8 }
 0x106   :  { %1689 = vmatpush3.msra.mxu1 %v613_v4 }
 0x107   :  { %1807 = vmatprep.subr.bf16.mxu1 %v1900_v3 }
 0x109   :  { %1691 = vmatmul.mubr.f32.vlgmr.msra.gmra.mrb[2].mxu1 %v584_v60 }
 0x10a   :  { %1809 = vmatpush3.bf16.msra.mxu1 %v1808_v49  ;;  %1699 = vmatprep.mubr.msk.f32.mxu1 %vm1901_vm1, %v1902_v8 }
 0x10b   :  { %1697 = vmatprep.subr.mxu1 %v1902_v8 }
 0x10e   :  { %1698 = vmatpush3.msra.mxu1 %v610_v59 }
 0x10f   :  { %1810 = vmatprep.subr.bf16.mxu1 %v1900_v3 }
 0x111   :  { %1700 = vmatmul.mubr.f32.vlgmr.msra.gmra.mrb[2].mxu1 %v585_v61 }
 0x112   :  { %1812 = vmatpush3.bf16.msra.mxu1 %v1802_v37  ;;  %1708 = vmatprep.mubr.msk.f32.mxu1 %vm1901_vm1, %v1902_v8 }
 0x113   :  { %1706 = vmatprep.subr.mxu1 %v1902_v8 }
 0x116   :  { %1707 = vmatpush3.msra.mxu1 %v523_v41 }
 0x117   :  { %1813 = vmatprep.subr.bf16.mxu1 %v1900_v3 }
 0x119   :  { %1709 = vmatmul.mubr.f32.vlgmr.msra.gmra.mrb[2].mxu1 %v586_v63 }
 0x11a   :  { %1815 = vmatpush3.bf16.msra.mxu1 %v1814_v50  ;;  %1717 = vmatprep.mubr.msk.f32.mxu1 %vm1901_vm1, %v1902_v8 }
 0x11b   :  { %1715 = vmatprep.subr.mxu1 %v1902_v8 }
 0x11e   :  { %1716 = vmatpush3.msra.mxu1 %v611_v62 }
 0x11f   :  { %1816 = vmatprep.subr.bf16.mxu1 %v1900_v3 }
 0x121   :  { %1718 = vmatmul.mubr.f32.vlgmr.msra.gmra.mrb[2].mxu1 %v584_v60 }
 0x122   :  { %1818 = vmatpush3.bf16.msra.mxu1 %v1802_v37  ;;  %1726 = vmatprep.mubr.msk.f32.mxu1 %vm1901_vm1, %v1902_v8 }
 0x123   :  { %1724 = vmatprep.subr.mxu1 %v1902_v8 }
 0x126   :  { %1725 = vmatpush3.msra.mxu1 %v523_v41  ;;  %v1903_v41 = vmov 0  }
 0x129   :  { %1727 = vmatmul.mubr.f32.vlgmr.msra.gmra.mrb[2].mxu1 %v584_v60 }
 0x1fc   :  { %v984_v5 = vpop.f32.mrb[2].mxu1 }
 0x1fd   :  { %v1839_v6 = vadd.f32 1.0, %v984_v5  ;;  %v1728_v7 = vpop.f32.mrb[3].mxu1 }
 0x1ff   :  { %v988_v11 = vmax.f32 %v1839_v6, 0.0 }
 0x201   :  { %v990_v12 = vsel %vm30_vm2, %v988_v11, 0 }
 0x202   :  { %v1060_v13 = vand.u32 4294901760, %v990_v12 }
 0x204   :  { %v1061_v14 = vsub.f32 %v990_v12, %v1060_v13 }
 0x206   :  { %v1062_v15 = vand.u32 4294901760, %v1061_v14 }
 0x208   :  { %v1063_v17 = vsub.f32 %v1061_v14, %v1062_v15 }
 0x20a   :  { %v1064_v18 = vand.u32 4294901760, %v1063_v17 }
 0x20c   :  { %1736 = vmatmul.mubr.f32.vlgmr.msra.gmra.mrb[2].mxu0 %v1064_v18 }
 0x20d   :  { %1824 = vmatpush3.bf16.msra.mxu0 %v1966_v29  ;;  %1744 = vmatprep.mubr.msk.f32.mxu0 %vm1901_vm1, %v1902_v8 }
 0x20e   :  { %1742 = vmatprep.subr.mxu0 %v1902_v8 }
 0x211   :  { %1743 = vmatpush3.msra.mxu0 %v1971_v30 }
 0x212   :  { %1825 = vmatprep.subr.bf16.mxu0 %v1900_v3 }
 0x214   :  { %1745 = vmatmul.mubr.f32.vlgmr.msra.gmra.mrb[2].mxu0 %v1060_v13 }
 0x215   :  { %1827 = vmatpush3.bf16.msra.mxu0 %v1979_v31  ;;  %1753 = vmatprep.mubr.msk.f32.mxu0 %vm1901_vm1, %v1902_v8 }
 0x216   :  { %1751 = vmatprep.subr.mxu0 %v1902_v8 }
 0x219   :  { %1752 = vmatpush3.msra.mxu0 %v1949_v16 }
 0x21a   :  { %1828 = vmatprep.subr.bf16.mxu0 %v1900_v3 }
 0x21c   :  { %1754 = vmatmul.mubr.f32.vlgmr.msra.gmra.mrb[2].mxu0 %v1061_v14 }
 0x21d   :  { %1830 = vmatpush3.bf16.msra.mxu0 %v1941_v9  ;;  %1762 = vmatprep.mubr.msk.f32.mxu0 %vm1901_vm1, %v1902_v8 }
 0x21e   :  { %1760 = vmatprep.subr.mxu0 %v1902_v8 }
 0x221   :  { %1761 = vmatpush3.msra.mxu0 %v1943_v10 }
 0x222   :  { %1831 = vmatprep.subr.bf16.mxu0 %v1900_v3 }
 0x224   :  { %1763 = vmatmul.mubr.f32.vlgmr.msra.gmra.mrb[2].mxu0 %v1062_v15 }
 0x225   :  { %1833 = vmatpush3.bf16.msra.mxu0 %v1956_v23  ;;  %1771 = vmatprep.mubr.msk.f32.mxu0 %vm1901_vm1, %v1902_v8 }
 0x226   :  { %1769 = vmatprep.subr.mxu0 %v1902_v8 }
 0x229   :  { %1770 = vmatpush3.msra.mxu0 %v1954_v20 }
 0x22a   :  { %1834 = vmatprep.subr.bf16.mxu0 %v1900_v3 }
 0x22c   :  { %1772 = vmatmul.mubr.f32.vlgmr.msra.gmra.mrb[2].mxu0 %v1060_v13 }
 0x22d   :  { %1836 = vmatpush3.bf16.msra.mxu0 %v1941_v9  ;;  %1780 = vmatprep.mubr.msk.f32.mxu0 %vm1901_vm1, %v1902_v8  ;;  %v1464_v9 = vlaneseq }
 0x22e   :  { %1778 = vmatprep.subr.mxu0 %v1902_v8 }
 0x22f   :  { %v1465_v23 = vshrl.u32 %v1464_v9, 7 }
 0x231   :  { %1779 = vmatpush3.msra.mxu0 %v1943_v10  ;;  %vm1469_vm4 = vcmp.lt.s32.totalorder %v1465_v23, 2  ;;  %v1518_v51 = vsub.s32 %v1515_v47, %v1465_v23 }
 0x234   :  { %1781 = vmatmul.mubr.f32.vlgmr.msra.gmra.mrb[2].mxu0 %v1060_v13 }
 0x307   :  { %v1460_v16 = vpop.f32.mrb[2].mxu0 }
 0x308   :  { %v1840_v19 = vadd.f32 %v2017_v53, %v1460_v16  ;;  %v1782_v21 = vpop.f32.mrb[3].mxu0 }
 0x30a   :  { %v1470_v22 = vsel %vm30_vm2, %v1840_v19, 0.0  ;;  %v1474_v20 = vand.u32 2147483647, %v1840_v19 }
 0x30b   :  { %1471 = vadd.xlane.f32.xlu0 %v1470_v22 }
 0x30c   :  { %v1475_v3 = vsel %vm30_vm2, %v1474_v20, 0.0 }
 0x30f   :  { %1476 = vadd.xlane.f32.xlu0 %v1475_v3 }
 0x398   :  { %v1472_v24 = vpop.xlane.xlu0 %1471 }
 0x399   :  { %v1473_v25 = vsel %vm1469_vm4, %v1472_v24, 0.0 }
 0x39c   :  { %v1477_v10 = vpop.xlane.xlu0 %1476 }
 0x39d   :  { %v1478_v26 = vsel %vm1469_vm4, %v1477_v10, 0.0 }
 0x39e   :  { %v1481_v27 = vsel %vm1480_vm5, %v1473_v25, %v1478_v26 }
 0x39f   :  { %v1483_v28 = vsel %vm1482_vm6, %v1481_v27, 0.0 }
 0x3a0   :  { %v1484_v29 = vrot.slane %v1483_v28, 4 }
 0x3a2   :  { %v1485_v30 = vadd.f32 %v1484_v29, %v1483_v28 }
 0x3a4   :  { %v1486_v31 = vrot.slane %v1485_v30, 2 }
 0x3a6   :  { %v1487_v32 = vadd.f32 %v1486_v31, %v1485_v30 }
 0x3a8   :  { %v1488_v33 = vrot.slane %v1487_v32, 1 }
 0x3aa   :  { %v1489_v35 = vadd.f32 %v1488_v33, %v1487_v32 }
 0x3ac   :  { %v1490_v36 = vadd.f32 %v1489_v35, %v1479_v34 }
 0x3ae   :  { %1492 = vst.msk [vmem:[#allocation2] sm:$0x1] %vm16_vm3, %v1490_v36 }
 0x3b5   :  { %v1496_v8 = vld [vmem:[#allocation2] sm:$0x1] }
 0x3b6   :  { %v1498_v37 = vshra.s32 %v1496_v8, 23  ;;  %v1501_v38 = vand.u32 8388607, %v1496_v8  ;;  %vm1503_vm8 = vcmp.gt.f32.partialorder %v1496_v8, 1.0 }
 0x3b8   :  { %v1499_v39 = vand.u32 255, %v1498_v37  ;;  %vm1502_vm7 = vcmp.ne.s32.totalorder %v1501_v38, 0 }
 0x3b9   :  { %v1504_v42 = vsel %vm1502_vm7, 1, %v1903_v41 }
 0x3ba   :  { %v1548_v40 = vadd.s32 4294967169, %v1499_v39 }
 0x3bc   :  { %v1505_v45 = vadd.s32 %v1548_v40, %v1504_v42 }
 0x3be   :  { %v1506_v46 = vsel %vm1503_vm8, %v1505_v45, 0 }
 0x3bf   :  { %vm1507_vm9 = vcmp.gt.s32.totalorder %v1506_v46, 0 }
 0x3c0   :  { %v1508_v48 = vsel %vm1507_vm9, %v1506_v46, 0 }
 0x3c1   :  { %vm1509_vm10 = vcmp.lt.s32.totalorder %v1508_v48, 126 }
 0x3c2   :  { %v1510_v49 = vsel %vm1509_vm10, %v1508_v48, 126 }
 0x3c3   :  { %v1511_v50 = vsub.s32 127, %v1510_v49 }
 0x3c5   :  { %v1512_v52 = vshll.u32 %v1511_v50, 23 }
 0x3c7   :  { %v1519_v53 = vrot.slane %v1512_v52, %v1518_v51 }
 0x3c9   :  { %v1526_v54 = vrot.slane %v1519_v53, %v1518_v51 }
 0x3cb   :  { %1527 = vrot.lane.b32.xlu1 %v1526_v54, %s1905_s1 }
 0x43d   :  { %v1528_v55 = vpop.permute.xlu1 %1527 }
 0x43e   :  { %v1530_v56 = vmul.f32 %v1528_v55, %v1496_v8 }
 0x440   :  { %1532 = vst.msk [vmem:[#allocation3] sm:$0x1] %vm1531_vm11, %v1530_v56 }
 0x441   :  { %1887 = shalt.err (!%p1884_p4)
}
 0x442   :  { %s1888_s30 = scalar_lea.hbm %s2090_s2, 16 }
 0x443   :  { %p1889_p5 = scmp.ne.s32.totalorder %s2090_s2, %s1888_s30  ;;  %p1892_p6 = scmp.lt.u32.totalorder %s1888_s30, %s2090_s2 }
 0x445   :  { %p1894_p7 = pnand %p1892_p6, %p1889_p5 }
 0x447   :  { %1897 = shalt.err (!%p1894_p7)
}
 0x448   :  { %1542 = dma.vmem_to_hbm [thread:$0]  %s1540_s25, 16, %s2090_s2, [#allocation4]  }
 0x449   :  { %1898 = dma.done.wait [#allocation4], 16  }
 0x44a   :  { %1899 = vsyncadd [#allocation4], 4294967280 }
 0x44b   :  { %1546 = vsyncpa [#allocation4], 1 }

</bundles_post_ra>
